<compile_context>
chip_gen: v5e
topology: v5e:2x2
jax: 0.10.0
libtpu: 0.0.40
codegen_flags: <defaults>
</compile_context>

<pallas_src>
import jax
import jax.numpy as jnp
from jax import lax
from jax.experimental import pallas as pl
from jax.experimental.pallas import tpu as pltpu


def _spectral_mul_kernel(xr_ref, xi_ref, wr_ref, wi_ref, or_ref, oi_ref):
    """out[b,o,m] = sum_i x[i,b,m] * w[i,o,m]   (complex, per retained mode m).

    Block shapes (leading size-1 axis is the lo/hi grid axis):
      xr/xi : (1, Cin, TB,  MPAD)   real / imag truncated spectrum
      wr/wi : (1, Cin, TCO, MPAD)   real / imag weights
      or/oi : (1, TB,  TCO, MPAD)
    MPAD is a multiple of 128 -> lane-dense vregs and unmasked stores.
    """
    xr = xr_ref[0]            # (Cin, TB, MPAD)
    xi = xi_ref[0]
    wr = wr_ref[0]            # (Cin, TCO, MPAD)
    wi = wi_ref[0]

    # Karatsuba terms that depend only on the weights -- hoisted out of the
    # Cin loop (loop-invariant).
    w_sum = wr + wi           # (Cin, TCO, MPAD)
    w_dif = wi - wr

    ci = xr.shape[0]
    acc_r = jnp.zeros(or_ref.shape[1:], jnp.float32)   # (TB, TCO, MPAD)
    acc_i = jnp.zeros(oi_ref.shape[1:], jnp.float32)

    # Small static channel loop (Cin=4 here): 3-multiply complex product
    #   k1 = wr*(xr+xi); k2 = xr*(wi-wr); k3 = xi*(wr+wi)
    #   real += k1 - k3 ; imag += k1 + k2
    for i in range(ci):
        xr_i = xr[i][:, None, :]          # (TB, 1, MPAD)  lead-dim slice (cheap)
        xi_i = xi[i][:, None, :]
        k1 = wr[i][None, :, :] * (xr_i + xi_i)      # (TB, TCO, MPAD)
        k2 = xr_i * w_dif[i][None, :, :]
        k3 = xi_i * w_sum[i][None, :, :]
        acc_r = acc_r + (k1 - k3)
        acc_i = acc_i + (k1 + k2)

    or_ref[0] = acc_r
    oi_ref[0] = acc_i


def spectral_mul_fused(xr, xi, wr, wi, *, tb=None, tco=None):
    """Single fused pallas_call for both frequency blocks.

    xr/xi : (2, Cin, B,    MPAD) float32
    wr/wi : (2, Cin, Cout, MPAD) float32
    returns (out_r, out_i) each (2, B, Cout, MPAD) float32
    """
    two, ci, b, mpad = xr.shape
    co = wr.shape[2]
    tb = b if tb is None else min(tb, b)
    tco = co if tco is None else min(tco, co)

    grid = (two, pl.cdiv(b, tb), pl.cdiv(co, tco))

    x_spec = pl.BlockSpec((1, ci, tb, mpad), lambda s, bi, oi: (s, 0, bi, 0))
    # B-invariant index_map: weights stay resident in VMEM across B tiles.
    w_spec = pl.BlockSpec((1, ci, tco, mpad), lambda s, bi, oi: (s, 0, oi, 0))
    o_spec = pl.BlockSpec((1, tb, tco, mpad), lambda s, bi, oi: (s, bi, oi, 0))

    # VMEM budget: all blocks double-buffered, plus headroom; capped below the
    # v7x 64 MiB physical limit.
    per_step = 4 * mpad * (2 * ci * tb + 2 * ci * tco + 2 * tb * tco)
    vmem_limit = int(min(60 * 1024 * 1024,
                         max(32 * 1024 * 1024, 3 * per_step)))

    out_r, out_i = pl.pallas_call(
        _spectral_mul_kernel,
        grid=grid,
        in_specs=[x_spec, x_spec, w_spec, w_spec],
        out_specs=[o_spec, o_spec],
        out_shape=[
            jax.ShapeDtypeStruct((two, b, co, mpad), jnp.float32),
            jax.ShapeDtypeStruct((two, b, co, mpad), jnp.float32),
        ],
        compiler_params=pltpu.CompilerParams(
            dimension_semantics=("parallel", "parallel", "parallel"),
            vmem_limit_bytes=vmem_limit,
        ),
    )(xr, xi, wr, wi)
    return out_r, out_i


def spectral_conv2d_fast(x, w1, w2, modes1, modes2):
    """Forward pass matching SpectralConv2d_fast.forward.

    x  : (B, Cin, H, W) float32, NCHW
    w1 : (Cin, Cout, modes1, modes2) complex64  (low positive freqs in dim -2)
    w2 : (Cin, Cout, modes1, modes2) complex64  (high/negative freqs in dim -2)
    """
    b, ci, h, w = x.shape
    co = w1.shape[1]
    wf = w // 2 + 1
    m = modes1 * modes2
    mpad = ((m + 127) // 128) * 128      # lane-dense last axis, multiple of 128

    x_ft = jnp.fft.rfft2(x)              # (B, Cin, H, Wf) complex64

    # Stack lo / hi retained-mode blocks on a leading axis of size 2 so one
    # pallas_call (with a parallel grid axis) handles both.
    x_sel = jnp.stack(
        [x_ft[:, :, :modes1, :modes2], x_ft[:, :, h - modes1:, :modes2]],
        axis=0)                                           # (2, B, Cin, m1, m2)
    x_sel = jnp.transpose(x_sel, (0, 2, 1, 3, 4)).reshape(2, ci, b, m)
    w_sel = jnp.stack([w1, w2], axis=0).reshape(2, ci, co, m)

    def _pad(a):
        return jnp.pad(a, [(0, 0)] * (a.ndim - 1) + [(0, mpad - m)])

    xr = _pad(jnp.real(x_sel).astype(jnp.float32))
    xi = _pad(jnp.imag(x_sel).astype(jnp.float32))
    wr = _pad(jnp.real(w_sel).astype(jnp.float32))
    wi = _pad(jnp.imag(w_sel).astype(jnp.float32))

    out_r, out_i = spectral_mul_fused(xr, xi, wr, wi)     # (2, B, Cout, MPAD)

    out_c = lax.complex(out_r[..., :m], out_i[..., :m])   # complex64
    out_c = out_c.reshape(2, b, co, modes1, modes2)

    # NOTE: like the PyTorch module, if 2*modes1 > H the hi block overwrites
    # part of the lo block (set order below matches torch's assignment order).
    out_ft = jnp.zeros((b, co, h, wf), dtype=jnp.complex64)
    out_ft = out_ft.at[:, :, :modes1, :modes2].set(out_c[0])
    out_ft = out_ft.at[:, :, h - modes1:, :modes2].set(out_c[1])

    return jnp.fft.irfft2(out_ft, s=(h, w))               # (B, Cout, H, W)


def _reference(x, w1, w2, modes1, modes2):
    """Pure-JAX reference mirroring the PyTorch module, for validation."""
    b, ci, h, w = x.shape
    co = w1.shape[1]
    x_ft = jnp.fft.rfft2(x)
    out_ft = jnp.zeros((b, co, h, w // 2 + 1), dtype=jnp.complex64)
    out_ft = out_ft.at[:, :, :modes1, :modes2].set(
        jnp.einsum('bixy,ioxy->boxy', x_ft[:, :, :modes1, :modes2], w1))
    out_ft = out_ft.at[:, :, h - modes1:, :modes2].set(
        jnp.einsum('bixy,ioxy->boxy', x_ft[:, :, -modes1:, :modes2], w2))
    return jnp.fft.irfft2(out_ft, s=(h, w))


if __name__ == "__main__":
    # Module hyper-parameters (small, consistent with the module).
    in_channels, out_channels = 4, 4
    modes1, modes2 = 6, 6
    B, H, W = 2, 16, 16

    key = jax.random.PRNGKey(0)
    kx, k1r, k1i, k2r, k2i = jax.random.split(key, 5)

    x = jax.random.normal(kx, (B, in_channels, H, W), dtype=jnp.float32)

    # Deterministic parameter init: scale * uniform complex, like __init__.
    scale = 1.0 / (in_channels * out_channels)
    wshape = (in_channels, out_channels, modes1, modes2)
    w1 = (scale * jax.random.uniform(k1r, wshape)
          + 1j * scale * jax.random.uniform(k1i, wshape)).astype(jnp.complex64)
    w2 = (scale * jax.random.uniform(k2r, wshape)
          + 1j * scale * jax.random.uniform(k2i, wshape)).astype(jnp.complex64)

    out = spectral_conv2d_fast(x, w1, w2, modes1, modes2)
    out = jax.block_until_ready(out)

    ref = jax.block_until_ready(_reference(x, w1, w2, modes1, modes2))
    assert out.shape == (B, out_channels, H, W)
    assert jnp.allclose(out, ref, atol=1e-5, rtol=1e-5), "mismatch vs reference"

    print("KERNEL_OK")
</pallas_src>

<mosaic_0001>
module attributes {stable_mosaic.version = 11 : i64} {
  func.func @_spectral_mul_kernel(%arg0: i32, %arg1: i32, %arg2: i32, %arg3: memref<1x4x2x128xf32, #tpu.memory_space<vmem>>, %arg4: memref<1x4x2x128xf32, #tpu.memory_space<vmem>>, %arg5: memref<1x4x4x128xf32, #tpu.memory_space<vmem>>, %arg6: memref<1x4x4x128xf32, #tpu.memory_space<vmem>>, %arg7: memref<1x2x4x128xf32, #tpu.memory_space<vmem>>, %arg8: memref<1x2x4x128xf32, #tpu.memory_space<vmem>>) attributes {dimension_semantics = [#tpu.dimension_semantics<parallel>, #tpu.dimension_semantics<parallel>, #tpu.dimension_semantics<parallel>], iteration_bounds = array<i64: 2, 1, 1>, scalar_prefetch = 0 : i64, scratch_operands = 0 : i64, tpu.core_type = #tpu.core_type<tc>, window_params = [{transform_indices = @transform_0, window_bounds = array<i64: 1, 4, 2, 128>}, {transform_indices = @transform_1, window_bounds = array<i64: 1, 4, 2, 128>}, {transform_indices = @transform_2, window_bounds = array<i64: 1, 4, 4, 128>}, {transform_indices = @transform_3, window_bounds = array<i64: 1, 4, 4, 128>}, {transform_indices = @transform_4, window_bounds = array<i64: 1, 2, 4, 128>}, {transform_indices = @transform_5, window_bounds = array<i64: 1, 2, 4, 128>}]} {
    %c0 = arith.constant 0 : index
    %c0_0 = arith.constant 0 : index
    %c0_1 = arith.constant 0 : index
    %c0_2 = arith.constant 0 : index
    %0 = vector.load %arg3[%c0, %c0_0, %c0_1, %c0_2] : memref<1x4x2x128xf32, #tpu.memory_space<vmem>>, vector<1x4x2x128xf32>
    %1 = vector.shape_cast %0 : vector<1x4x2x128xf32> to vector<4x2x128xf32>
    %c0_3 = arith.constant 0 : index
    %c0_4 = arith.constant 0 : index
    %c0_5 = arith.constant 0 : index
    %c0_6 = arith.constant 0 : index
    %2 = vector.load %arg4[%c0_3, %c0_4, %c0_5, %c0_6] : memref<1x4x2x128xf32, #tpu.memory_space<vmem>>, vector<1x4x2x128xf32>
    %3 = vector.shape_cast %2 : vector<1x4x2x128xf32> to vector<4x2x128xf32>
    %c0_7 = arith.constant 0 : index
    %c0_8 = arith.constant 0 : index
    %c0_9 = arith.constant 0 : index
    %c0_10 = arith.constant 0 : index
    %4 = vector.load %arg5[%c0_7, %c0_8, %c0_9, %c0_10] : memref<1x4x4x128xf32, #tpu.memory_space<vmem>>, vector<1x4x4x128xf32>
    %5 = vector.shape_cast %4 : vector<1x4x4x128xf32> to vector<4x4x128xf32>
    %c0_11 = arith.constant 0 : index
    %c0_12 = arith.constant 0 : index
    %c0_13 = arith.constant 0 : index
    %c0_14 = arith.constant 0 : index
    %6 = vector.load %arg6[%c0_11, %c0_12, %c0_13, %c0_14] : memref<1x4x4x128xf32, #tpu.memory_space<vmem>>, vector<1x4x4x128xf32>
    %7 = vector.shape_cast %6 : vector<1x4x4x128xf32> to vector<4x4x128xf32>
    %8 = arith.addf %5, %7 : vector<4x4x128xf32>
    %9 = arith.subf %7, %5 : vector<4x4x128xf32>
    %cst = arith.constant 0.000000e+00 : f32
    %10 = vector.broadcast %cst : f32 to vector<2x4x128xf32>
    %cst_15 = arith.constant 0.000000e+00 : f32
    %11 = vector.broadcast %cst_15 : f32 to vector<2x4x128xf32>
    %12 = vector.extract_strided_slice %1 {offsets = [0, 0, 0], sizes = [1, 2, 128], strides = [1, 1, 1]} : vector<4x2x128xf32> to vector<1x2x128xf32>
    %13 = vector.shape_cast %12 : vector<1x2x128xf32> to vector<2x128xf32>
    %14 = vector.shape_cast %13 : vector<2x128xf32> to vector<2x1x128xf32>
    %15 = vector.extract_strided_slice %3 {offsets = [0, 0, 0], sizes = [1, 2, 128], strides = [1, 1, 1]} : vector<4x2x128xf32> to vector<1x2x128xf32>
    %16 = vector.shape_cast %15 : vector<1x2x128xf32> to vector<2x128xf32>
    %17 = vector.shape_cast %16 : vector<2x128xf32> to vector<2x1x128xf32>
    %18 = vector.extract_strided_slice %5 {offsets = [0, 0, 0], sizes = [1, 4, 128], strides = [1, 1, 1]} : vector<4x4x128xf32> to vector<1x4x128xf32>
    %19 = vector.shape_cast %18 : vector<1x4x128xf32> to vector<4x128xf32>
    %20 = vector.shape_cast %19 : vector<4x128xf32> to vector<1x4x128xf32>
    %21 = arith.addf %14, %17 : vector<2x1x128xf32>
    %22 = vector.broadcast %20 : vector<1x4x128xf32> to vector<2x4x128xf32>
    %23 = vector.broadcast %21 : vector<2x1x128xf32> to vector<2x4x128xf32>
    %24 = arith.mulf %22, %23 : vector<2x4x128xf32>
    %25 = vector.extract_strided_slice %9 {offsets = [0, 0, 0], sizes = [1, 4, 128], strides = [1, 1, 1]} : vector<4x4x128xf32> to vector<1x4x128xf32>
    %26 = vector.shape_cast %25 : vector<1x4x128xf32> to vector<4x128xf32>
    %27 = vector.shape_cast %26 : vector<4x128xf32> to vector<1x4x128xf32>
    %28 = vector.broadcast %14 : vector<2x1x128xf32> to vector<2x4x128xf32>
    %29 = vector.broadcast %27 : vector<1x4x128xf32> to vector<2x4x128xf32>
    %30 = arith.mulf %28, %29 : vector<2x4x128xf32>
    %31 = vector.extract_strided_slice %8 {offsets = [0, 0, 0], sizes = [1, 4, 128], strides = [1, 1, 1]} : vector<4x4x128xf32> to vector<1x4x128xf32>
    %32 = vector.shape_cast %31 : vector<1x4x128xf32> to vector<4x128xf32>
    %33 = vector.shape_cast %32 : vector<4x128xf32> to vector<1x4x128xf32>
    %34 = vector.broadcast %17 : vector<2x1x128xf32> to vector<2x4x128xf32>
    %35 = vector.broadcast %33 : vector<1x4x128xf32> to vector<2x4x128xf32>
    %36 = arith.mulf %34, %35 : vector<2x4x128xf32>
    %37 = arith.subf %24, %36 : vector<2x4x128xf32>
    %38 = arith.addf %10, %37 : vector<2x4x128xf32>
    %39 = arith.addf %24, %30 : vector<2x4x128xf32>
    %40 = arith.addf %11, %39 : vector<2x4x128xf32>
    %41 = vector.extract_strided_slice %1 {offsets = [1, 0, 0], sizes = [1, 2, 128], strides = [1, 1, 1]} : vector<4x2x128xf32> to vector<1x2x128xf32>
    %42 = vector.shape_cast %41 : vector<1x2x128xf32> to vector<2x128xf32>
    %43 = vector.shape_cast %42 : vector<2x128xf32> to vector<2x1x128xf32>
    %44 = vector.extract_strided_slice %3 {offsets = [1, 0, 0], sizes = [1, 2, 128], strides = [1, 1, 1]} : vector<4x2x128xf32> to vector<1x2x128xf32>
    %45 = vector.shape_cast %44 : vector<1x2x128xf32> to vector<2x128xf32>
    %46 = vector.shape_cast %45 : vector<2x128xf32> to vector<2x1x128xf32>
    %47 = vector.extract_strided_slice %5 {offsets = [1, 0, 0], sizes = [1, 4, 128], strides = [1, 1, 1]} : vector<4x4x128xf32> to vector<1x4x128xf32>
    %48 = vector.shape_cast %47 : vector<1x4x128xf32> to vector<4x128xf32>
    %49 = vector.shape_cast %48 : vector<4x128xf32> to vector<1x4x128xf32>
    %50 = arith.addf %43, %46 : vector<2x1x128xf32>
    %51 = vector.broadcast %49 : vector<1x4x128xf32> to vector<2x4x128xf32>
    %52 = vector.broadcast %50 : vector<2x1x128xf32> to vector<2x4x128xf32>
    %53 = arith.mulf %51, %52 : vector<2x4x128xf32>
    %54 = vector.extract_strided_slice %9 {offsets = [1, 0, 0], sizes = [1, 4, 128], strides = [1, 1, 1]} : vector<4x4x128xf32> to vector<1x4x128xf32>
    %55 = vector.shape_cast %54 : vector<1x4x128xf32> to vector<4x128xf32>
    %56 = vector.shape_cast %55 : vector<4x128xf32> to vector<1x4x128xf32>
    %57 = vector.broadcast %43 : vector<2x1x128xf32> to vector<2x4x128xf32>
    %58 = vector.broadcast %56 : vector<1x4x128xf32> to vector<2x4x128xf32>
    %59 = arith.mulf %57, %58 : vector<2x4x128xf32>
    %60 = vector.extract_strided_slice %8 {offsets = [1, 0, 0], sizes = [1, 4, 128], strides = [1, 1, 1]} : vector<4x4x128xf32> to vector<1x4x128xf32>
    %61 = vector.shape_cast %60 : vector<1x4x128xf32> to vector<4x128xf32>
    %62 = vector.shape_cast %61 : vector<4x128xf32> to vector<1x4x128xf32>
    %63 = vector.broadcast %46 : vector<2x1x128xf32> to vector<2x4x128xf32>
    %64 = vector.broadcast %62 : vector<1x4x128xf32> to vector<2x4x128xf32>
    %65 = arith.mulf %63, %64 : vector<2x4x128xf32>
    %66 = arith.subf %53, %65 : vector<2x4x128xf32>
    %67 = arith.addf %38, %66 : vector<2x4x128xf32>
    %68 = arith.addf %53, %59 : vector<2x4x128xf32>
    %69 = arith.addf %40, %68 : vector<2x4x128xf32>
    %70 = vector.extract_strided_slice %1 {offsets = [2, 0, 0], sizes = [1, 2, 128], strides = [1, 1, 1]} : vector<4x2x128xf32> to vector<1x2x128xf32>
    %71 = vector.shape_cast %70 : vector<1x2x128xf32> to vector<2x128xf32>
    %72 = vector.shape_cast %71 : vector<2x128xf32> to vector<2x1x128xf32>
    %73 = vector.extract_strided_slice %3 {offsets = [2, 0, 0], sizes = [1, 2, 128], strides = [1, 1, 1]} : vector<4x2x128xf32> to vector<1x2x128xf32>
    %74 = vector.shape_cast %73 : vector<1x2x128xf32> to vector<2x128xf32>
    %75 = vector.shape_cast %74 : vector<2x128xf32> to vector<2x1x128xf32>
    %76 = vector.extract_strided_slice %5 {offsets = [2, 0, 0], sizes = [1, 4, 128], strides = [1, 1, 1]} : vector<4x4x128xf32> to vector<1x4x128xf32>
    %77 = vector.shape_cast %76 : vector<1x4x128xf32> to vector<4x128xf32>
    %78 = vector.shape_cast %77 : vector<4x128xf32> to vector<1x4x128xf32>
    %79 = arith.addf %72, %75 : vector<2x1x128xf32>
    %80 = vector.broadcast %78 : vector<1x4x128xf32> to vector<2x4x128xf32>
    %81 = vector.broadcast %79 : vector<2x1x128xf32> to vector<2x4x128xf32>
    %82 = arith.mulf %80, %81 : vector<2x4x128xf32>
    %83 = vector.extract_strided_slice %9 {offsets = [2, 0, 0], sizes = [1, 4, 128], strides = [1, 1, 1]} : vector<4x4x128xf32> to vector<1x4x128xf32>
    %84 = vector.shape_cast %83 : vector<1x4x128xf32> to vector<4x128xf32>
    %85 = vector.shape_cast %84 : vector<4x128xf32> to vector<1x4x128xf32>
    %86 = vector.broadcast %72 : vector<2x1x128xf32> to vector<2x4x128xf32>
    %87 = vector.broadcast %85 : vector<1x4x128xf32> to vector<2x4x128xf32>
    %88 = arith.mulf %86, %87 : vector<2x4x128xf32>
    %89 = vector.extract_strided_slice %8 {offsets = [2, 0, 0], sizes = [1, 4, 128], strides = [1, 1, 1]} : vector<4x4x128xf32> to vector<1x4x128xf32>
    %90 = vector.shape_cast %89 : vector<1x4x128xf32> to vector<4x128xf32>
    %91 = vector.shape_cast %90 : vector<4x128xf32> to vector<1x4x128xf32>
    %92 = vector.broadcast %75 : vector<2x1x128xf32> to vector<2x4x128xf32>
    %93 = vector.broadcast %91 : vector<1x4x128xf32> to vector<2x4x128xf32>
    %94 = arith.mulf %92, %93 : vector<2x4x128xf32>
    %95 = arith.subf %82, %94 : vector<2x4x128xf32>
    %96 = arith.addf %67, %95 : vector<2x4x128xf32>
    %97 = arith.addf %82, %88 : vector<2x4x128xf32>
    %98 = arith.addf %69, %97 : vector<2x4x128xf32>
    %99 = vector.extract_strided_slice %1 {offsets = [3, 0, 0], sizes = [1, 2, 128], strides = [1, 1, 1]} : vector<4x2x128xf32> to vector<1x2x128xf32>
    %100 = vector.shape_cast %99 : vector<1x2x128xf32> to vector<2x128xf32>
    %101 = vector.shape_cast %100 : vector<2x128xf32> to vector<2x1x128xf32>
    %102 = vector.extract_strided_slice %3 {offsets = [3, 0, 0], sizes = [1, 2, 128], strides = [1, 1, 1]} : vector<4x2x128xf32> to vector<1x2x128xf32>
    %103 = vector.shape_cast %102 : vector<1x2x128xf32> to vector<2x128xf32>
    %104 = vector.shape_cast %103 : vector<2x128xf32> to vector<2x1x128xf32>
    %105 = vector.extract_strided_slice %5 {offsets = [3, 0, 0], sizes = [1, 4, 128], strides = [1, 1, 1]} : vector<4x4x128xf32> to vector<1x4x128xf32>
    %106 = vector.shape_cast %105 : vector<1x4x128xf32> to vector<4x128xf32>
    %107 = vector.shape_cast %106 : vector<4x128xf32> to vector<1x4x128xf32>
    %108 = arith.addf %101, %104 : vector<2x1x128xf32>
    %109 = vector.broadcast %107 : vector<1x4x128xf32> to vector<2x4x128xf32>
    %110 = vector.broadcast %108 : vector<2x1x128xf32> to vector<2x4x128xf32>
    %111 = arith.mulf %109, %110 : vector<2x4x128xf32>
    %112 = vector.extract_strided_slice %9 {offsets = [3, 0, 0], sizes = [1, 4, 128], strides = [1, 1, 1]} : vector<4x4x128xf32> to vector<1x4x128xf32>
    %113 = vector.shape_cast %112 : vector<1x4x128xf32> to vector<4x128xf32>
    %114 = vector.shape_cast %113 : vector<4x128xf32> to vector<1x4x128xf32>
    %115 = vector.broadcast %101 : vector<2x1x128xf32> to vector<2x4x128xf32>
    %116 = vector.broadcast %114 : vector<1x4x128xf32> to vector<2x4x128xf32>
    %117 = arith.mulf %115, %116 : vector<2x4x128xf32>
    %118 = vector.extract_strided_slice %8 {offsets = [3, 0, 0], sizes = [1, 4, 128], strides = [1, 1, 1]} : vector<4x4x128xf32> to vector<1x4x128xf32>
    %119 = vector.shape_cast %118 : vector<1x4x128xf32> to vector<4x128xf32>
    %120 = vector.shape_cast %119 : vector<4x128xf32> to vector<1x4x128xf32>
    %121 = vector.broadcast %104 : vector<2x1x128xf32> to vector<2x4x128xf32>
    %122 = vector.broadcast %120 : vector<1x4x128xf32> to vector<2x4x128xf32>
    %123 = arith.mulf %121, %122 : vector<2x4x128xf32>
    %124 = arith.subf %111, %123 : vector<2x4x128xf32>
    %125 = arith.addf %96, %124 : vector<2x4x128xf32>
    %126 = arith.addf %111, %117 : vector<2x4x128xf32>
    %127 = arith.addf %98, %126 : vector<2x4x128xf32>
    %c0_16 = arith.constant 0 : index
    %c0_17 = arith.constant 0 : index
    %c0_18 = arith.constant 0 : index
    %c0_19 = arith.constant 0 : index
    %128 = vector.load %arg7[%c0_16, %c0_17, %c0_18, %c0_19] : memref<1x2x4x128xf32, #tpu.memory_space<vmem>>, vector<1x2x4x128xf32>
    %129 = vector.shape_cast %128 : vector<1x2x4x128xf32> to vector<2x4x128xf32>
    %130 = vector.shape_cast %125 : vector<2x4x128xf32> to vector<1x2x4x128xf32>
    tpu.vector_store %arg7[%c0_16, %c0_17, %c0_18, %c0_19], %130 {strides = array<i32>} : memref<1x2x4x128xf32, #tpu.memory_space<vmem>>, vector<1x2x4x128xf32>,
    %c0_20 = arith.constant 0 : index
    %c0_21 = arith.constant 0 : index
    %c0_22 = arith.constant 0 : index
    %c0_23 = arith.constant 0 : index
    %131 = vector.load %arg8[%c0_20, %c0_21, %c0_22, %c0_23] : memref<1x2x4x128xf32, #tpu.memory_space<vmem>>, vector<1x2x4x128xf32>
    %132 = vector.shape_cast %131 : vector<1x2x4x128xf32> to vector<2x4x128xf32>
    %133 = vector.shape_cast %127 : vector<2x4x128xf32> to vector<1x2x4x128xf32>
    tpu.vector_store %arg8[%c0_20, %c0_21, %c0_22, %c0_23], %133 {strides = array<i32>} : memref<1x2x4x128xf32, #tpu.memory_space<vmem>>, vector<1x2x4x128xf32>,
    return
  }
  func.func @transform_0(%arg0: i32, %arg1: i32, %arg2: i32) -> (i32, i32, i32, i32) {
    %c0_i32 = arith.constant 0 : i32
    %c0_i32_0 = arith.constant 0 : i32
    %c0_i32_1 = arith.constant 0 : i32
    return %arg0, %c0_i32, %arg1, %c0_i32_0 : i32, i32, i32, i32
  }
  func.func @transform_1(%arg0: i32, %arg1: i32, %arg2: i32) -> (i32, i32, i32, i32) {
    %c0_i32 = arith.constant 0 : i32
    %c0_i32_0 = arith.constant 0 : i32
    %c0_i32_1 = arith.constant 0 : i32
    return %arg0, %c0_i32, %arg1, %c0_i32_0 : i32, i32, i32, i32
  }
  func.func @transform_2(%arg0: i32, %arg1: i32, %arg2: i32) -> (i32, i32, i32, i32) {
    %c0_i32 = arith.constant 0 : i32
    %c0_i32_0 = arith.constant 0 : i32
    %c0_i32_1 = arith.constant 0 : i32
    return %arg0, %c0_i32, %arg2, %c0_i32_0 : i32, i32, i32, i32
  }
  func.func @transform_3(%arg0: i32, %arg1: i32, %arg2: i32) -> (i32, i32, i32, i32) {
    %c0_i32 = arith.constant 0 : i32
    %c0_i32_0 = arith.constant 0 : i32
    %c0_i32_1 = arith.constant 0 : i32
    return %arg0, %c0_i32, %arg2, %c0_i32_0 : i32, i32, i32, i32
  }
  func.func @transform_4(%arg0: i32, %arg1: i32, %arg2: i32) -> (i32, i32, i32, i32) {
    %c0_i32 = arith.constant 0 : i32
    %c0_i32_0 = arith.constant 0 : i32
    return %arg0, %arg1, %arg2, %c0_i32 : i32, i32, i32, i32
  }
  func.func @transform_5(%arg0: i32, %arg1: i32, %arg2: i32) -> (i32, i32, i32, i32) {
    %c0_i32 = arith.constant 0 : i32
    %c0_i32_0 = arith.constant 0 : i32
    return %arg0, %arg1, %arg2, %c0_i32 : i32, i32, i32, i32
  }
}

</mosaic_0001>

<bundles_post_ra>
// kernel: tpu_custom_call.1
= control target key start
LH: loop header
LB: loop body
LE: loop exit
PB: predicated region body
PF: predicated region fallthrough
CT: control target
= control target key end

     0   :  { %s1527_s0 = inlined_call_operand.hbm [shape: f32[2,4,2,128], index: 0, kind: input, shape index: {}]   ;;  %s1528_s1 = inlined_call_operand.hbm [shape: f32[2,4,2,128], index: 1, kind: input, shape index: {}]   ;;  %s1529_s2 = inlined_call_operand.hbm [shape: f32[2,4,4,128], index: 2, kind: input, shape index: {}]   ;;  %s1530_s3 = inlined_call_operand.hbm [shape: f32[2,4,4,128], index: 3, kind: input, shape index: {}]   ;;  %s1531_s4 = inlined_call_operand.hbm [shape: f32[2,2,4,128], index: 4, kind: output, shape index: {0}]   ;;  %s1532_s5 = inlined_call_operand.hbm [shape: f32[2,2,4,128], index: 5, kind: output, shape index: {1}]  }
   0x1   :  { %1539 = sst [smem:[#allocation24_spill]] %s1527_s0 }
   0x2   :  { %1540 = sst [smem:[#allocation25_spill]] %s1528_s1 }
   0x3   :  { %11 = vsyncpa [#allocation3], 0 }
   0x4   :  { %13 = vsyncpa [#allocation3 + $0x1], 0 }
   0x5   :  { %14 = vsyncpa [#allocation6], 0 }
   0x6   :  { %16 = vsyncpa [#allocation6 + $0x1], 0 }
   0x7   :  { %17 = vsyncpa [#allocation9], 0 }
   0x8   :  { %19 = vsyncpa [#allocation9 + $0x1], 0 }
   0x9   :  { %20 = vsyncpa [#allocation4], 0 }
   0xa   :  { %22 = vsyncpa [#allocation4 + $0x1], 0 }
   0xb   :  { %23 = vsyncpa [#allocation12], 0 }
   0xc   :  { %25 = vsyncpa [#allocation12 + $0x1], 0  ;;  %s1240_s18 = smov 0   ;;  %s1242_s19 = smov 0  }
   0xd   :  { %s1244_s20 = smov 0   ;;  %s1246_s21 = smov 0  }
   0xe   :  { %s1248_s22 = smov 0   ;;  %s1250_s23 = smov 0  }
   0xf LB: > { %1541 = sst [smem:[#allocation18_spill]] %s1182_s18  ;;  %s1271_s24 = sadd.s32 4294967295, %s1202_s23   ;;  %s1202_s23 = sphi %s1250_s23, %s31_s23   ;;  %s1198_s22 = sphi %s1248_s22, %s1564_s22   ;;  %s1194_s21 = sphi %s1246_s21, %s1563_s21   ;;  %s1190_s20 = sphi %s1244_s20, %s1559_s20   ;;  %s1186_s19 = sphi %s1242_s19, %s1562_s19   ;;  %s1182_s18 = sphi %s1240_s18, %s1561_s18  }
  0x10   : > { %1542 = sst [smem:[#allocation19_spill]] %s1190_s20  ;;  %s836_s25 = sadd.s32 4294967294, %s1202_s23  }
  0x11   : > { %1543 = sst [smem:[#allocation20_spill]] %s1202_s23  ;;  %s50_s26 = sadd.s32 1, %s1198_s22 }
  0x12   : > { %s59_s27 = sadd.s32 1, %s1190_s20  ;;  %p52_p0 = scmp.ge.s32.totalorder %s50_s26, 2 }
  0x13   : > { %p66_p1 = scmp.ne.s32.totalorder %s1190_s20, %s1186_s19  ;;  %p67_p2 = scmp.eq.s32.totalorder %s1202_s23, 0 }
  0x14   : > { %p72_p3 = scmp.ne.s32.totalorder %s1186_s19, %s1182_s18  ;;  %s1566_s26 = smov (%p52_p0, %s50_s26), 0 }
  0x15   : > { %1544 = sst [smem:[#allocation21_spill]] %s1566_s26  ;;  %p1283_p4 = por %p67_p2, %p66_p1 }
  0x16   : > { %p73_p5 = scmp.eq.s32.totalorder %s1271_s24, 0  ;;  %s54_s29 = ssub.s32 %s1198_s22, %s1566_s26 }
  0x17   : > { %p184_p6 = scmp.eq.s32.totalorder %s1271_s24, 1  ;;  %p57_p7 = scmp.eq.s32.totalorder %s54_s29, 0 }
  0x18   : > { %p1291_p8 = por %p73_p5, %p72_p3  ;;  %p190_p10 = scmp.eq.s32.totalorder %s836_s25, 1 }
  0x19   : > { %p1295_p9 = por %p184_p6, %p66_p1  ;;  %p838_p12 = scmp.ge.s32.totalorder %s1202_s23, 2 }
  0x1a   : > { %s1300_s7 = scalar_select %p57_p7, %s1190_s20, %s59_s27  }
  0x1b   : > { %p1302_p11 = por %p190_p10, %p72_p3  ;;  %p904_p13 = scmp.lt.s32.totalorder %s1202_s23, 2 }
  0x1c   : > { %1548 = sst [smem:[#allocation22_spill]] %s1300_s7  ;;  %s1309_s9 = sand.u32 1, %s1190_s20  }
  0x1d   : > { %s1549_s8 = scalar_select %p1302_p11, 1, 0 }
  0x1e   : > { %s839_s10 = sshll.u32 %s1309_s9, 3  ;;  %s866_s11 = sshll.u32 %s1198_s22, 3 }
  0x1f   : > { %1550 = sst [smem:[#allocation23_spill]] %s1549_s8  ;;  %p1315_p0 = pnand %p904_p13, %p1283_p4 }
  0x20   : > { %s263_s13 = sand.u32 1, %s1202_s23   ;;  %s1552_s1 = sld [smem:[#allocation25_spill]] }
  0x21   : > { %s267_s25 = scalar_lea.vmem [#allocation5], %s839_s10  ;;  %s1323_s29 = scalar_lea.sflag [#allocation6], %s263_s13 }
  0x22   : > { %s276_s27 = sshll.u32 %s267_s25, 4  ;;  %s1204_s28 = smov 32   ;;  %s277_s27 = int_to_ptr.vmem [resolvable:$true] %s276_s27 }
  0x23   : > { %s1205_s26 = smov 2   ;;  %p851_p1 = scmp.ge.s32.totalorder %s1202_s23, 1 }
  0x24   : > { %p330_p2 = scmp.lt.s32.totalorder %s1202_s23, 3  ;;  %s1554_s0 = sld [smem:[#allocation24_spill]] }
  0x25   : > { %s244_s7 = scalar_lea.vmem [#allocation2], %s839_s10  ;;  %s241_s20 = scalar_lea.sflag [#allocation3], %s1309_s9 }
  0x26   : > { %s273_s16 = scalar_lea.hbm %s1552_s1, %s866_s11  ;;  %p1330_p3 = pnand %p851_p1, %p330_p2 }
  0x27   : > { %s274_s17 = sshll.u32 %s273_s16, 4  ;;  %s253_s13 = sshll.u32 %s244_s7, 4  ;;  %s275_s17 = int_to_ptr.hbm [resolvable:$true] %s274_s17  ;;  %s254_s13 = int_to_ptr.vmem [resolvable:$true] %s253_s13 }
  0x28   : > { %890 = dma.hbm_to_vmem [thread:$0]  (!%p1315_p0), %s275_s17, 128, %s277_s27, %s1323_s29, %s1204_s28, %s1204_s28, %s1205_s26  }
  0x29   : > { %s845_s17 = sshll.u32 %s1309_s9, 4  ;;  %s868_s27 = sshll.u32 %s1198_s22, 4 }
  0x2a   : > { %s250_s25 = scalar_lea.hbm %s1554_s0, %s866_s11  ;;  %s296_s18 = scalar_lea.hbm %s1529_s2, %s868_s27 }
  0x2b   : > { %s251_s1 = sshll.u32 %s250_s25, 4  ;;  %s297_s15 = sshll.u32 %s296_s18, 4  ;;  %s252_s1 = int_to_ptr.hbm [resolvable:$true] %s251_s1  ;;  %s298_s15 = int_to_ptr.hbm [resolvable:$true] %s297_s15 }
  0x2c   : > { %887 = dma.hbm_to_vmem [thread:$0]  (!%p1315_p0), %s252_s1, 128, %s254_s13, %s241_s20, %s1204_s28, %s1204_s28, %s1205_s26  }
  0x2d   : > { %s290_s11 = scalar_lea.vmem [#allocation7], %s845_s17  ;;  %s1206_s10 = smov 64  }
  0x2e   : > { %s299_s16 = sshll.u32 %s290_s11, 4  ;;  %s1207_s7 = smov 4   ;;  %s300_s16 = int_to_ptr.vmem [resolvable:$true] %s299_s16 }
  0x2f   : > { %893 = dma.hbm_to_vmem [thread:$0]  (!%p1315_p0), %s298_s15, 256, %s300_s16, %s1323_s29, %s1206_s10, %s1206_s10, %s1207_s7  }
  0x30   : > { %s319_s1 = scalar_lea.hbm %s1530_s3, %s868_s27  ;;  %s313_s20 = scalar_lea.vmem [#allocation8], %s845_s17 }
  0x31   : > { %s322_s26 = sshll.u32 %s313_s20, 4  ;;  %s320_s28 = sshll.u32 %s319_s1, 4  ;;  %s323_s26 = int_to_ptr.vmem [resolvable:$true] %s322_s26  ;;  %s321_s28 = int_to_ptr.hbm [resolvable:$true] %s320_s28 }
  0x32   : > { %s310_s23 = scalar_lea.sflag [#allocation9], %s1309_s9  ;;  %334 = sbr.rel (%p1330_p3) target bundleno = 108 (0x6c), region = 36 }
  0x33   : > { %896 = dma.hbm_to_vmem [thread:$0]  (!%p1315_p0), %s321_s28, 256, %s323_s26, %s310_s23, %s1206_s10, %s1206_s10, %s1207_s7  }
  0x34   : > { %s1357_s18 = sand.u32 (!%p1330_p3), 1, %s1186_s19  }
  0x35   : > { %s1360_s8 = sshll.u32 (!%p1330_p3), %s1357_s18, 3  ;;  %s337_s0 = scalar_lea.sflag (!%p1330_p3), [#allocation3], %s1357_s18 }
  0x36   : > { %s340_s29 = scalar_lea.vmem (!%p1330_p3), [#allocation2], %s1360_s8 }
  0x37   : > { %1161 = dma.done.wait (%p1291_p8), %s337_s0, 128  }
  0x38   : > { %1163 = vsyncadd (%p1291_p8), %s337_s0, 4294967168  ;;  %s346_s9 = sand.u32 1, %s1271_s24   ;;  %s350_s14 = scalar_lea.vmem [#allocation5], %s1360_s8 }
  0x39   : > { %s347_s12 = scalar_lea.sflag [#allocation6], %s346_s9 }
  0x3a   : > { %1165 = dma.done.wait (%p1291_p8), %s347_s12, 384  }
  0x3b   : > { %1167 = vsyncadd (%p1291_p8), %s347_s12, 4294966912  ;;  %s854_s13 = sshll.u32 %s1357_s18, 4  ;;  %s367_s27 = scalar_lea.sflag [#allocation9], %s1357_s18 }
  0x3c   : > { %s360_s17 = scalar_lea.vmem [#allocation7], %s854_s13  ;;  %s370_s15 = scalar_lea.vmem [#allocation8], %s854_s13 }
  0x3d   : > { %1169 = dma.done.wait (%p1291_p8), %s367_s27, 256  }
  0x3e   : > { %1171 = vsyncadd (%p1291_p8), %s367_s27, 4294967040  ;;  %v1380_v0 = vld [vmem:[%s340_s29] sm:$0x3]  ;;  %v1382_v1 = vld [vmem:[%s340_s29 + $0x2] sm:$0x3]  ;;  %s870_s24 = sshll.u32 %s1194_s21, 3 }
  0x3f   : > { %v1384_v2 = vld [vmem:[%s340_s29 + $0x4] sm:$0x3]  ;;  %v1386_v3 = vld [vmem:[%s340_s29 + $0x6] sm:$0x3]  ;;  %v424_v4 = vld [vmem:[%s350_s14] sm:$0x3]  ;;  %s612_s10 = scalar_lea.hbm %s1531_s4, %s870_s24  ;;  %s1469_s26 = scalar_lea.hbm %s1532_s5, %s870_s24 }
  0x40   : > { %v425_v5 = vld [vmem:[%s350_s14 + $0x2] sm:$0x3]  ;;  %v426_v6 = vld [vmem:[%s350_s14 + $0x4] sm:$0x3]  ;;  %v427_v7 = vld [vmem:[%s350_s14 + $0x6] sm:$0x3]  ;;  %v450_v9 = vadd.f32 %v424_v4, %v1380_v0 }
  0x41   : > { %v1388_v8 = vld [vmem:[%s360_s17] sm:$0xf]  ;;  %v486_v10 = vadd.f32 %v425_v5, %v1382_v1  ;;  %v1392_v11 = vld [vmem:[%s360_s17 + $0x4] sm:$0xf]  ;;  %v1394_v12 = vld [vmem:[%s360_s17 + $0x8] sm:$0xf]  ;;  %v522_v14 = vadd.f32 %v426_v6, %v1384_v2  ;;  %v558_v15 = vadd.f32 %v427_v7, %v1386_v3 }
  0x42   : > { %v1396_v13 = vld [vmem:[%s360_s17 + $0xc] sm:$0xf]  ;;  %v432_v16 = vld [vmem:[%s370_s15] sm:$0xf]  ;;  %v433_v17 = vld [vmem:[%s370_s15 + $0x4] sm:$0xf] }
  0x43   : > { %v1400_v18 = vld [vmem:[%s370_s15 + $0x8] sm:$0xf]  ;;  %v1402_v19 = vld [vmem:[%s370_s15 + $0xc] sm:$0xf]  ;;  %v436_v20 = vadd.f32 %v432_v16, %v1388_v8  ;;  %v437_v21 = vadd.f32 %v433_v17, %v1392_v11  ;;  %v454_v23 = vperm.slane %v450_v9, 0  ;;  %v466_v25 = vperm.slane %v424_v4, 0 }
  0x44   : > { %v438_v22 = vadd.f32 %v1400_v18, %v1394_v12  ;;  %v439_v24 = vadd.f32 %v1402_v19, %v1396_v13  ;;  %v490_v26 = vperm.slane %v486_v10, 0  ;;  %v502_v27 = vperm.slane %v425_v5, 0  ;;  %s1435_s30 = scalar_lea.vmem [#allocation10], %s1360_s8  ;;  %s615_s25 = sshll.u32 %s612_s10, 4  ;;  %s1460_s25 = int_to_ptr.hbm [resolvable:$true] %s615_s25 }
  0x45   : > { %v1411_v28 = vmul.f32 %v454_v23, %v1388_v8  ;;  %v526_v29 = vperm.slane %v522_v14, 0  ;;  %v538_v30 = vperm.slane %v426_v6, 0  ;;  %v562_v31 = vperm.slane %v558_v15, 0  ;;  %s613_s7 = sshll.u32 %s1435_s30, 4  ;;  %s593_s28 = scalar_lea.sflag [#allocation4], %s1357_s18  ;;  %s1455_s7 = int_to_ptr.vmem [resolvable:$true] %s613_s7 }
  0x46   : > { %v470_v32 = vmul.f32 %v466_v25, %v436_v20  ;;  %v1414_v33 = vmul.f32 %v490_v26, %v1392_v11  ;;  %v506_v34 = vmul.f32 %v502_v27, %v437_v21  ;;  %v574_v35 = vperm.slane %v427_v7, 0  ;;  %s1094_s23 = sshra.s32 %s1460_s25, 4  ;;  %s1100_s21 = scalar_lea.hbm %s1531_s4, 16  ;;  %s1095_s23 = int_to_ptr.hbm [resolvable:$true] %s1094_s23 }
  0x47   : > { %v1417_v36 = vmul.f32 %v526_v29, %v1394_v12  ;;  %v542_v37 = vmul.f32 %v538_v30, %v438_v22  ;;  %v1420_v38 = vmul.f32 %v562_v31, %v1396_v13  ;;  %v445_v39 = vrot.slane %v1380_v0, 1  ;;  %s1096_s0 = scalar_lea.hbm %s1095_s23, 8  ;;  %p1101_p7 = scmp.lt.s32.totalorder %s1095_s23, %s1531_s4 }
  0x48   : > { %v472_v40 = vsub.f32 %v1411_v28, %v470_v32  ;;  %v508_v41 = vsub.f32 %v1414_v33, %v506_v34  ;;  %v578_v42 = vmul.f32 %v574_v35, %v439_v24  ;;  %v448_v43 = vrot.slane %v424_v4, 1  ;;  %p1097_p4 = scmp.ne.s32.totalorder %s1095_s23, %s1096_s0  ;;  %p1102_p8 = scmp.lt.s32.totalorder %s1100_s21, %s1096_s0 }
  0x49   : > { %v544_v44 = vsub.f32 %v1417_v36, %v542_v37  ;;  %v481_v45 = vrot.slane %v1382_v1, 1  ;;  %v484_v46 = vrot.slane %v425_v5, 1  ;;  %v517_v47 = vrot.slane %v1384_v2, 1 }
  0x4a   : > { %v510_v48 = vadd.f32 %v508_v41, %v472_v40  ;;  %v580_v49 = vsub.f32 %v1420_v38, %v578_v42  ;;  %v451_v50 = vadd.f32 %v448_v43, %v445_v39  ;;  %v467_v51 = vperm.slane %v448_v43, 0  ;;  %p1098_p5 = pnand %p1097_p4, %p1295_p9  ;;  %p1103_p10 = por %p1102_p8, %p1101_p7 }
  0x4b   : > { %v487_v52 = vadd.f32 %v484_v46, %v481_v45  ;;  %v503_v53 = vperm.slane %v484_v46, 0  ;;  %v520_v54 = vrot.slane %v426_v6, 1  ;;  %v553_v55 = vrot.slane %v1386_v3, 1 }
  0x4c   : > { %v546_v56 = vadd.f32 %v544_v44, %v510_v48  ;;  %v455_v57 = vperm.slane %v451_v50, 0  ;;  %v471_v58 = vmul.f32 %v467_v51, %v436_v20  ;;  %v556_v59 = vrot.slane %v427_v7, 1  ;;  %p1099_p6 = pneg %p1098_p5 }
  0x4d   : > { %v491_v60 = vperm.slane %v487_v52, 0  ;;  %v507_v61 = vmul.f32 %v503_v53, %v437_v21  ;;  %v523_v62 = vadd.f32 %v520_v54, %v517_v47  ;;  %v539_v63 = vperm.slane %v520_v54, 0 }
  0x4e   : > { %v582_v4 = vadd.f32 %v580_v49, %v546_v56  ;;  %v459_v5 = vmul.f32 %v455_v57, %v1388_v8  ;;  %v559_v9 = vadd.f32 %v556_v59, %v553_v55  ;;  %v575_v10 = vperm.slane %v556_v59, 0  ;;  %p1104_p13 = pnand %p1103_p10, %p1099_p6 }
  0x4f   : > { %v495_v6 = vmul.f32 %v491_v60, %v1392_v11  ;;  %v527_v14 = vperm.slane %v523_v62, 0  ;;  %v543_v15 = vmul.f32 %v539_v63, %v438_v22  ;;  %v440_v23 = vsub.f32 %v432_v16, %v1388_v8 }
  0x50   : > { %588 = vst [vmem:[%s1435_s30] sm:$0xf] %v582_v4  ;;  %v473_v7 = vsub.f32 %v459_v5, %v471_v58  ;;  %v563_v20 = vperm.slane %v559_v9, 0  ;;  %v579_v21 = vmul.f32 %v575_v10, %v439_v24  ;;  %v441_v25 = vsub.f32 %v433_v17, %v1392_v11 }
  0x51   : > { %v509_v26 = vsub.f32 %v495_v6, %v507_v61  ;;  %v531_v27 = vmul.f32 %v527_v14, %v1394_v12  ;;  %v442_v29 = vsub.f32 %v1400_v18, %v1394_v12  ;;  %v443_v22 = vsub.f32 %v1402_v19, %v1396_v13 }
  0x52   : > { %v567_v8 = vmul.f32 %v563_v20, %v1396_v13  ;;  %v460_v16 = vperm.slane %v1380_v0, 0  ;;  %v496_v11 = vperm.slane %v1382_v1, 0  ;;  %v532_v17 = vperm.slane %v1384_v2, 0 }
  0x53   : > { %v511_v24 = vadd.f32 %v509_v26, %v473_v7  ;;  %v545_v30 = vsub.f32 %v531_v27, %v543_v15  ;;  %v568_v12 = vperm.slane %v1386_v3, 0  ;;  %v461_v18 = vperm.slane %v445_v39, 0 }
  0x54   : > { %v581_v19 = vsub.f32 %v567_v8, %v579_v21  ;;  %v464_v31 = vmul.f32 %v460_v16, %v440_v23  ;;  %v500_v32 = vmul.f32 %v496_v11, %v441_v25  ;;  %v536_v34 = vmul.f32 %v532_v17, %v442_v29 }
  0x55   : > { %v547_v35 = vadd.f32 %v545_v30, %v511_v24  ;;  %v572_v13 = vmul.f32 %v568_v12, %v443_v22  ;;  %v465_v0 = vmul.f32 %v461_v18, %v440_v23  ;;  %v497_v1 = vperm.slane %v481_v45, 0 }
  0x56   : > { %v476_v2 = vadd.f32 %v464_v31, %v1411_v28  ;;  %v512_v37 = vadd.f32 %v500_v32, %v1414_v33  ;;  %v548_v3 = vadd.f32 %v536_v34, %v1417_v36  ;;  %v533_v39 = vperm.slane %v517_v47, 0 }
  0x57   : > { %v583_v40 = vadd.f32 %v581_v19, %v547_v35  ;;  %v477_v41 = vadd.f32 %v465_v0, %v459_v5  ;;  %v501_v42 = vmul.f32 %v497_v1, %v441_v25  ;;  %v584_v44 = vadd.f32 %v572_v13, %v1420_v38 }
  0x58   : > { %v514_v43 = vadd.f32 %v512_v37, %v476_v2  ;;  %v537_v46 = vmul.f32 %v533_v39, %v442_v29  ;;  %v569_v45 = vperm.slane %v553_v55, 0 }
  0x59   : > { %589 = vst [vmem:[%s1435_s30 + $0x4] sm:$0xf] %v583_v40  ;;  %v513_v28 = vadd.f32 %v501_v42, %v495_v6 }
  0x5a   : > { %v550_v33 = vadd.f32 %v548_v3, %v514_v43  ;;  %v549_v36 = vadd.f32 %v537_v46, %v531_v27  ;;  %v573_v47 = vmul.f32 %v569_v45, %v443_v22 }
  0x5b   : > { %1107 = shalt.err (!%p1104_p13)
}
  0x5c   : > { %s1208_s13 = smov 64   ;;  %s1209_s17 = smov 4   ;;  %v515_v38 = vadd.f32 %v513_v28, %v477_v41  ;;  %v586_v48 = vadd.f32 %v584_v44, %v550_v33  ;;  %v585_v49 = vadd.f32 %v573_v47, %v567_v8 }
  0x5d   : > { %880 = dma.vmem_to_hbm [thread:$0]  (%p1295_p9), %s1455_s7, 128, %s1460_s25, %s593_s28, %s1208_s13, %s1208_s13, %s1209_s17  }
  0x5e   : > { %s417_s27 = scalar_lea.vmem [#allocation11], %s1360_s8  ;;  %s635_s24 = sshll.u32 %s1469_s26, 4  ;;  %v551_v50 = vadd.f32 %v549_v36, %v515_v38  ;;  %s636_s24 = int_to_ptr.hbm [resolvable:$true] %s635_s24 }
  0x5f   : > { %s633_s15 = sshll.u32 %s417_s27, 4  ;;  %590 = vst [vmem:[%s417_s27] sm:$0xf] %v586_v48  ;;  %s598_s30 = scalar_lea.sflag [#allocation12], %s1357_s18  ;;  %s634_s15 = int_to_ptr.vmem [resolvable:$true] %s633_s15 }
  0x60   : > { %v587_v51 = vadd.f32 %v585_v49, %v551_v50  ;;  %s1122_s11 = sshra.s32 %s636_s24, 4  ;;  %s1128_s7 = scalar_lea.hbm %s1532_s5, 16  ;;  %s1123_s11 = int_to_ptr.hbm [resolvable:$true] %s1122_s11 }
  0x61   : > { %s1124_s16 = scalar_lea.hbm %s1123_s11, 8  ;;  %p1129_p3 = scmp.lt.s32.totalorder %s1123_s11, %s1532_s5 }
  0x62   : > { %591 = vst [vmem:[%s417_s27 + $0x4] sm:$0xf] %v587_v51  ;;  %p1125_p0 = scmp.ne.s32.totalorder %s1123_s11, %s1124_s16  ;;  %p1130_p4 = scmp.lt.s32.totalorder %s1128_s7, %s1124_s16 }
  0x64   : > { %p1126_p1 = pnand %p1125_p0, %p1295_p9  ;;  %p1131_p5 = por %p1130_p4, %p1129_p3 }
  0x66   : > { %p1127_p2 = pneg %p1126_p1 }
  0x68   : > { %p1132_p6 = pnand %p1131_p5, %p1127_p2 }
  0x6a   : > { %1135 = shalt.err (!%p1132_p6)
}
  0x6b   : > { %881 = dma.vmem_to_hbm [thread:$0]  (%p1295_p9), %s634_s15, 128, %s636_s24, %s598_s30, %s1208_s13, %s1208_s13, %s1209_s17  }
  0x6c PF: > { %s1555_s18 = sld [smem:[#allocation18_spill]]  ;;  %p898_p7 = pnand %p838_p12, %p1302_p11 }
  0x6d   : > { %s1557_s26 = sld [smem:[#allocation20_spill]] }
  0x6e   : > { %p899_p8 = pneg %p898_p7 }
  0x72   : > { %s650_s28 = sand.u32 1, %s1555_s18  }
  0x73   : > { %s651_s23 = scalar_lea.sflag [#allocation4], %s650_s28 }
  0x74   : > { %1173 = dma.done.wait (%p899_p8), %s651_s23, 128  }
  0x75   : > { %1175 = vsyncadd (%p899_p8), %s651_s23, 4294967168  ;;  %s661_s0 = scalar_lea.sflag [#allocation12], %s650_s28 }
  0x76   : > { %1177 = dma.done.wait (%p899_p8), %s661_s0, 128  }
  0x77   : > { %1179 = vsyncadd (%p899_p8), %s661_s0, 4294967168  ;;  %s31_s23 = sadd.s32 1, %s1557_s26   ;;  %s1558_s6 = sld [smem:[#allocation19_spill]] }
  0x78   : > { %p28_p10 = scmp.ge.s32.totalorder %s31_s23, 4   ;;  %s1559_s20 = sld [smem:[#allocation22_spill]] }
  0x79   : > { %s1560_s29 = sld [smem:[#allocation21_spill]]  ;;  %s1561_s18 = smov %s1186_s19 }
  0x7a   : > { %s1563_s21 = smov %s1198_s22 }
  0x7b   :  { %30 = sbr.rel (!%p28_p10) target bundleno = 15 (0xf), region = 135 }
  0x7d   : > { %s1562_s19 = smov %s1558_s6 }
  0x7f   : > { %s1564_s22 = smov %s1560_s29 }
  0x80   :  { %667 = vsyncpa [#allocation3], 1 }
  0x81   :  { %669 = vsyncpa [#allocation3 + $0x1], 1 }
  0x82   :  { %670 = vsyncpa [#allocation6], 1 }
  0x83   :  { %672 = vsyncpa [#allocation6 + $0x1], 1 }
  0x84   :  { %673 = vsyncpa [#allocation9], 1 }
  0x85   :  { %675 = vsyncpa [#allocation9 + $0x1], 1 }
  0x86   :  { %676 = vsyncpa [#allocation4], 1 }
  0x87   :  { %678 = vsyncpa [#allocation4 + $0x1], 1 }
  0x88   :  { %679 = vsyncpa [#allocation12], 1 }
  0x89   :  { %681 = vsyncpa [#allocation12 + $0x1], 1 }

</bundles_post_ra>
